<compile_context>
chip_gen: v7x
topology: tpu7x:2x2x1
jax: 0.10.0
libtpu: 0.0.40
codegen_flags: <defaults>
</compile_context>

<pallas_src>
import math
import functools

import jax
import jax.numpy as jnp
from jax import lax
from jax.experimental import pallas as pl
from jax.experimental.pallas import tpu as pltpu

_EPS = 1e-12  # torch.nn.functional.normalize default eps


def _round_up(v, m):
    return (v + m - 1) // m * m


def _pick_tile(total, candidates):
    for c in candidates:
        if total % c == 0:
            return c
    return candidates[-1]


# ---------------------------------------------------------------------------
# Pre-kernel: L2-normalize rows of the weight matrix, emit bf16 MXU operands.
# ---------------------------------------------------------------------------
def _row_normalize_kernel(w_ref, o_ref):
    w = w_ref[...].astype(jnp.float32)                      # [TR, D]
    ss = jnp.sum(w * w, axis=1, keepdims=True)
    inv = lax.rsqrt(jnp.maximum(ss, _EPS * _EPS))           # == 1 / max(||w||, eps)
    o_ref[...] = (w * inv).astype(o_ref.dtype)


def _normalize_rows_bf16(w):
    R, D = w.shape
    tr = _pick_tile(R, (1024, 512, 256, 128))
    # keep double-buffered in (f32) + out (bf16) tiles comfortably inside VMEM
    while tr > 128 and 2 * tr * D * (4 + 2) > 32 * 1024 * 1024:
        tr //= 2
    return pl.pallas_call(
        _row_normalize_kernel,
        out_shape=jax.ShapeDtypeStruct((R, D), jnp.bfloat16),
        grid=(R // tr,),
        in_specs=[pl.BlockSpec((tr, D), lambda i: (i, 0))],
        out_specs=pl.BlockSpec((tr, D), lambda i: (i, 0)),
        compiler_params=pltpu.CompilerParams(
            dimension_semantics=("parallel",),
            vmem_limit_bytes=48 * 1024 * 1024),
    )(w)


# ---------------------------------------------------------------------------
# Main kernel: cosine similarities (+ optional proxy reduction) for one
# (batch-tile, class-tile) grid point.
# ---------------------------------------------------------------------------
def _cosine_linear_kernel(x_ref, w_ref, sigma_ref, o_ref, *, nb_proxy, reduce):
    # x_ref : [TB, D]            f32   raw input rows
    # w_ref : [nb_proxy, TC, D]  bf16  pre-normalized weight rows
    # sigma : [1, 1]             f32   SMEM scalar
    # o_ref : [TB, TC]           f32
    x = x_ref[...].astype(jnp.float32)
    ss = jnp.sum(x * x, axis=1, keepdims=True)
    inv = lax.rsqrt(jnp.maximum(ss, _EPS * _EPS))            # 1 / max(||x||, eps), EUP
    sigma = sigma_ref[0, 0]
    if not reduce:
        inv = inv * sigma                                    # fold sigma into row scale
    xb = (x * inv).astype(jnp.bfloat16)                      # bf16 MXU operand

    dn = (((1,), (1,)), ((), ()))                            # contract feature dim, no .T

    if not reduce:
        out = lax.dot_general(xb, w_ref[0], dn,
                              preferred_element_type=jnp.float32)
        o_ref[...] = out.astype(o_ref.dtype)
    else:
        logits = [
            lax.dot_general(xb, w_ref[p], dn, preferred_element_type=jnp.float32)
            for p in range(nb_proxy)
        ]                                                    # nb_proxy x [TB, TC]
        m = logits[0]
        for l in logits[1:]:
            m = jnp.maximum(m, l)
        exps = [jnp.exp(l - m) for l in logits]
        denom = exps[0]
        for e in exps[1:]:
            denom = denom + e
        num = exps[0] * logits[0]
        for e, l in zip(exps[1:], logits[1:]):
            num = num + e * l
        out = sigma * num * pl.reciprocal(denom, approx=True)
        o_ref[...] = out.astype(o_ref.dtype)


# ---------------------------------------------------------------------------
# Wrapper
# ---------------------------------------------------------------------------
def cosine_linear(x, weight, sigma=None, *, nb_proxy=1, to_reduce=False):
    """Pallas TPU implementation of CosineLinear.forward."""
    B, D = x.shape
    OP, Dw = weight.shape
    assert D == Dw, "feature-dim mismatch"
    reduce = bool(to_reduce) and nb_proxy > 1

    if reduce:
        assert OP % nb_proxy == 0, "out_features * nb_proxy shape error"
        n_out = OP // nb_proxy
        p_eff = nb_proxy
        # PyTorch column j = class * nb_proxy + proxy  ->  [proxy, class, D]
        w3 = weight.reshape(n_out, nb_proxy, D).transpose(1, 0, 2)
    else:
        n_out = OP
        p_eff = 1
        w3 = weight.reshape(1, OP, D)

    # Lane-dense output: pad class axis to a multiple of 128; pad batch to 8.
    n_pad = _round_up(n_out, 128)
    if n_pad != n_out:
        w3 = jnp.pad(w3, ((0, 0), (0, n_pad - n_out), (0, 0)))
    b_pad = _round_up(B, 8)
    xp = x.astype(jnp.float32)
    if b_pad != B:
        xp = jnp.pad(xp, ((0, b_pad - B), (0, 0)))

    # Hoisted weight normalization (done once, not per batch tile) -> bf16.
    w_norm = _normalize_rows_bf16(
        w3.reshape(p_eff * n_pad, D).astype(jnp.float32)
    ).reshape(p_eff, n_pad, D)

    sigma_arr = (jnp.ones((1, 1), jnp.float32) if sigma is None
                 else jnp.asarray(sigma, jnp.float32).reshape(1, 1))

    tb = _pick_tile(b_pad, (512, 256, 128, 64, 32, 16, 8))
    tc = _pick_tile(n_pad, (1024, 512, 256, 128))

    # Keep double-buffered tiles + in-kernel temporaries under ~40 MiB
    # (v7x has 64 MiB VMEM per TensorCore; v5e/v6e have 128 MiB).
    def _tile_bytes(tb_, tc_):
        dbuf = 2 * (tb_ * D * 4 + p_eff * tc_ * D * 2 + tb_ * tc_ * 4)
        tmp = (3 * p_eff if reduce else 1) * tb_ * tc_ * 4
        return dbuf + tmp

    while _tile_bytes(tb, tc) > 40 * 1024 * 1024 and (tc > 128 or tb > 8):
        if tc > 128:
            tc //= 2
        else:
            tb //= 2

    grid = (b_pad // tb, n_pad // tc)
    kernel = functools.partial(_cosine_linear_kernel, nb_proxy=p_eff, reduce=reduce)

    cost = pl.CostEstimate(
        flops=int(2 * b_pad * D * p_eff * n_pad),
        transcendentals=int(b_pad + (p_eff * b_pad * n_pad if reduce else 0)),
        bytes_accessed=int(4 * b_pad * D + 2 * p_eff * n_pad * D + 4 * b_pad * n_pad),
    )

    out = pl.pallas_call(
        kernel,
        out_shape=jax.ShapeDtypeStruct((b_pad, n_pad), jnp.float32),
        grid=grid,
        in_specs=[
            pl.BlockSpec((tb, D), lambda i, j: (i, 0)),                 # x tile
            pl.BlockSpec((p_eff, tc, D), lambda i, j: (0, j, 0)),       # weight tile
            pl.BlockSpec((1, 1), lambda i, j: (0, 0),
                         memory_space=pltpu.MemorySpace.SMEM),          # sigma
        ],
        out_specs=pl.BlockSpec((tb, tc), lambda i, j: (i, j)),
        compiler_params=pltpu.CompilerParams(
            dimension_semantics=("parallel", "parallel"),
            vmem_limit_bytes=48 * 1024 * 1024),
        cost_estimate=cost,
    )(xp, w_norm, sigma_arr)

    return out[:B, :n_out]


# ---------------------------------------------------------------------------
# Pure-JAX reference (mirrors the PyTorch module)
# ---------------------------------------------------------------------------
def _reference(x, weight, sigma, nb_proxy, to_reduce):
    xn = x / jnp.maximum(jnp.linalg.norm(x, axis=1, keepdims=True), _EPS)
    wn = weight / jnp.maximum(jnp.linalg.norm(weight, axis=1, keepdims=True), _EPS)
    out = xn @ wn.T
    if to_reduce and nb_proxy > 1:
        bs = out.shape[0]
        nb_classes = out.shape[1] // nb_proxy
        simi = out.reshape(bs, nb_classes, nb_proxy)
        att = jax.nn.softmax(simi, axis=-1)
        out = (att * simi).sum(-1)
    if sigma is not None:
        out = sigma.reshape(())[()] * out
    return out


if __name__ == "__main__":
    # Small config consistent with CosineLinear.__init__
    in_features = 32
    out_features = 16
    nb_proxy = 2
    B = 8

    key = jax.random.PRNGKey(0)
    kx, kw = jax.random.split(key)
    x = jax.random.normal(kx, (B, in_features), dtype=jnp.float32)

    # reset_parameters(): weight ~ U(-stdv, stdv), stdv = 1/sqrt(in_features); sigma = 1
    stdv = 1.0 / math.sqrt(in_features)
    weight = jax.random.uniform(
        kw, (out_features * nb_proxy, in_features),
        minval=-stdv, maxval=stdv, dtype=jnp.float32)
    sigma = jnp.ones((1,), dtype=jnp.float32)

    # to_reduce=True path (proxy softmax reduction)
    out_red = jax.block_until_ready(
        cosine_linear(x, weight, sigma, nb_proxy=nb_proxy, to_reduce=True))
    ref_red = _reference(x, weight, sigma, nb_proxy, True)
    assert out_red.shape == (B, out_features), out_red.shape
    # bf16 MXU operands -> relaxed tolerance (values are cosines in [-1, 1])
    assert jnp.allclose(out_red, ref_red, atol=2e-2, rtol=2e-2), \
        float(jnp.max(jnp.abs(out_red - ref_red)))

    # to_reduce=False path (plain cosine linear over all proxies)
    out_full = jax.block_until_ready(
        cosine_linear(x, weight, sigma, nb_proxy=nb_proxy, to_reduce=False))
    ref_full = _reference(x, weight, sigma, nb_proxy, False)
    assert out_full.shape == (B, out_features * nb_proxy), out_full.shape
    assert jnp.allclose(out_full, ref_full, atol=2e-2, rtol=2e-2), \
        float(jnp.max(jnp.abs(out_full - ref_full)))

    print("KERNEL_OK")
</pallas_src>

<mosaic_0001>
module attributes {stable_mosaic.version = 11 : i64} {
  func.func @_row_normalize_kernel(%arg0: i32, %arg1: memref<256x32xf32, #tpu.memory_space<vmem>>, %arg2: memref<256x32xbf16, #tpu.memory_space<vmem>>) attributes {dimension_semantics = [#tpu.dimension_semantics<parallel>], iteration_bounds = array<i64: 1>, scalar_prefetch = 0 : i64, scratch_operands = 0 : i64, tpu.core_type = #tpu.core_type<tc>, window_params = [{transform_indices = @transform_0, window_bounds = array<i64: 256, 32>}, {transform_indices = @transform_1, window_bounds = array<i64: 256, 32>}]} {
    %c0 = arith.constant 0 : index
    %c0_0 = arith.constant 0 : index
    %0 = vector.load %arg1[%c0, %c0_0] : memref<256x32xf32, #tpu.memory_space<vmem>>, vector<256x32xf32>
    %1 = arith.mulf %0, %0 : vector<256x32xf32>
    %cst = arith.constant dense<0.000000e+00> : vector<256xf32>
    %2 = vector.multi_reduction <add>, %1, %cst [1] : vector<256x32xf32> to vector<256xf32>
    %3 = vector.shape_cast %2 : vector<256xf32> to vector<256x1xf32>
    %cst_1 = arith.constant 1.000000e-24 : f32
    %4 = vector.broadcast %cst_1 : f32 to vector<256x1xf32>
    %5 = arith.maximumf %3, %4 : vector<256x1xf32>
    %6 = math.rsqrt %5 : vector<256x1xf32>
    %7 = vector.broadcast %6 : vector<256x1xf32> to vector<256x32xf32>
    %8 = arith.mulf %0, %7 : vector<256x32xf32>
    %9 = arith.truncf %8 : vector<256x32xf32> to vector<256x32xbf16>
    %c0_2 = arith.constant 0 : index
    %c0_3 = arith.constant 0 : index
    %10 = vector.load %arg2[%c0_2, %c0_3] : memref<256x32xbf16, #tpu.memory_space<vmem>>, vector<256x32xbf16>
    tpu.vector_store %arg2[%c0_2, %c0_3], %9 {strides = array<i32>} : memref<256x32xbf16, #tpu.memory_space<vmem>>, vector<256x32xbf16>,
    return
  }
  func.func @transform_0(%arg0: i32) -> (i32, i32) {
    %c0_i32 = arith.constant 0 : i32
    %c0_i32_0 = arith.constant 0 : i32
    return %arg0, %c0_i32 : i32, i32
  }
  func.func @transform_1(%arg0: i32) -> (i32, i32) {
    %c0_i32 = arith.constant 0 : i32
    %c0_i32_0 = arith.constant 0 : i32
    return %arg0, %c0_i32 : i32, i32
  }
}

</mosaic_0001>

<bundles_post_ra>
// kernel: tpu_custom_call.1
= control target key start
LH: loop header
LB: loop body
LE: loop exit
PB: predicated region body
PF: predicated region fallthrough
CT: control target
= control target key end

     0   :  { %vm72_vm0 = vcmask 261120   ;;  %vm393_vm1 = vcmask 257024   ;;  %s984_s0 = inlined_call_operand.vmem [shape: f32[256,32], index: 0, kind: input, shape index: {}]   ;;  %s985_s1 = inlined_call_operand.vmem [shape: bf16[256,32], index: 1, kind: output, shape index: {}]  }
   0x1   :  { %v571_v0 = vld [vmem:[%s984_s0 + $0x10] sm:$0xff]  ;;  %v576_v1 = vld [vmem:[%s984_s0] sm:$0xff]  ;;  %v581_v2 = vld [vmem:[%s984_s0 + $0x18] sm:$0xff] }
   0x2   :  { %v42_v3 = vmul.f32 %v571_v0, %v571_v0  ;;  %v40_v4 = vmul.f32 %v576_v1, %v576_v1  ;;  %v43_v5 = vmul.f32 %v581_v2, %v581_v2  ;;  %v592_v6 = vld [vmem:[%s984_s0 + $0x8] sm:$0xff]  ;;  %v604_v9 = vld [vmem:[%s984_s0 + $0x20] sm:$0xff]  ;;  %v617_v16 = vld [vmem:[%s984_s0 + $0x38] sm:$0xff] }
   0x3   :  { %v41_v7 = vmul.f32 %v592_v6, %v592_v6  ;;  %v599_v8 = vld [vmem:[%s984_s0 + $0x28] sm:$0xff]  ;;  %v44_v15 = vmul.f32 %v604_v9, %v604_v9  ;;  %v622_v17 = vld [vmem:[%s984_s0 + $0x30] sm:$0xff]  ;;  %v47_v20 = vmul.f32 %v617_v16, %v617_v16  ;;  %v638_v23 = vld [vmem:[%s984_s0 + $0x40] sm:$0xff] }
   0x4   :  { %v79_v10 = vsel %vm72_vm0, %v42_v3, 0.0  ;;  %v73_v11 = vsel %vm72_vm0, %v40_v4, 0.0  ;;  %v82_v12 = vsel %vm72_vm0, %v43_v5, 0.0  ;;  %v45_v14 = vmul.f32 %v599_v8, %v599_v8  ;;  %v633_v22 = vld [vmem:[%s984_s0 + $0x48] sm:$0xff]  ;;  %v649_v28 = vld [vmem:[%s984_s0 + $0x58] sm:$0xff]  ;;  %v654_v29 = vld [vmem:[%s984_s0 + $0x50] sm:$0xff] }
   0x5   :  { %80 = vadd.xlane.f32.xlu1 %v79_v10  ;;  %74 = vadd.xlane.f32.xlu0 %v73_v11  ;;  %v76_v13 = vsel %vm72_vm0, %v41_v7, 0.0  ;;  %v85_v19 = vsel %vm72_vm0, %v44_v15, 0.0  ;;  %v46_v21 = vmul.f32 %v622_v17, %v622_v17  ;;  %v94_v24 = vsel %vm72_vm0, %v47_v20, 0.0  ;;  %v665_v34 = vld [vmem:[%s984_s0 + $0x68] sm:$0xff]  ;;  %v670_v35 = vld [vmem:[%s984_s0 + $0x60] sm:$0xff]  ;;  %v681_v40 = vld [vmem:[%s984_s0 + $0x78] sm:$0xff] }
   0x6   :  { %v88_v18 = vsel %vm72_vm0, %v45_v14, 0.0  ;;  %v49_v26 = vmul.f32 %v633_v22, %v633_v22  ;;  %v48_v27 = vmul.f32 %v638_v23, %v638_v23  ;;  %v51_v32 = vmul.f32 %v649_v28, %v649_v28  ;;  %v686_v41 = vld [vmem:[%s984_s0 + $0x70] sm:$0xff]  ;;  %v697_v46 = vld [vmem:[%s984_s0 + $0x88] sm:$0xff]  ;;  %v702_v47 = vld [vmem:[%s984_s0 + $0x80] sm:$0xff] }
   0x7   :  { %v91_v25 = vsel %vm72_vm0, %v46_v21, 0.0  ;;  %v50_v33 = vmul.f32 %v654_v29, %v654_v29  ;;  %v53_v38 = vmul.f32 %v665_v34, %v665_v34  ;;  %v52_v39 = vmul.f32 %v670_v35, %v670_v35  ;;  %v713_v52 = vld [vmem:[%s984_s0 + $0x98] sm:$0xff]  ;;  %v718_v53 = vld [vmem:[%s984_s0 + $0x90] sm:$0xff]  ;;  %v729_v58 = vld [vmem:[%s984_s0 + $0xa8] sm:$0xff] }
   0x8   :  { %v100_v30 = vsel %vm72_vm0, %v49_v26, 0.0  ;;  %v97_v31 = vsel %vm72_vm0, %v48_v27, 0.0  ;;  %v106_v36 = vsel %vm72_vm0, %v51_v32, 0.0  ;;  %v55_v44 = vmul.f32 %v681_v40, %v681_v40  ;;  %v734_v59 = vld [vmem:[%s984_s0 + $0xa0] sm:$0xff]  ;;  %v745_v3 = vld [vmem:[%s984_s0 + $0xb8] sm:$0xff]  ;;  %v750_v4 = vld [vmem:[%s984_s0 + $0xb0] sm:$0xff] }
   0x9   :  { %83 = vadd.xlane.f32.xlu1 %v82_v12  ;;  %77 = vadd.xlane.f32.xlu0 %v76_v13  ;;  %v103_v37 = vsel %vm72_vm0, %v50_v33, 0.0  ;;  %v112_v42 = vsel %vm72_vm0, %v53_v38, 0.0  ;;  %v109_v43 = vsel %vm72_vm0, %v52_v39, 0.0  ;;  %v54_v45 = vmul.f32 %v686_v41, %v686_v41  ;;  %v761_v12 = vld [vmem:[%s984_s0 + $0xc8] sm:$0xff]  ;;  %v766_v13 = vld [vmem:[%s984_s0 + $0xc0] sm:$0xff]  ;;  %v777_v20 = vld [vmem:[%s984_s0 + $0xd8] sm:$0xff] }
   0xa   :  { %v118_v48 = vsel %vm72_vm0, %v55_v44, 0.0  ;;  %v57_v50 = vmul.f32 %v697_v46, %v697_v46  ;;  %v56_v51 = vmul.f32 %v702_v47, %v702_v47  ;;  %v59_v56 = vmul.f32 %v713_v52, %v713_v52  ;;  %v782_v21 = vld [vmem:[%s984_s0 + $0xd0] sm:$0xff]  ;;  %v809_v38 = vld [vmem:[%s984_s0 + $0xf8] sm:$0xff] }
   0xb   :  { %v115_v49 = vsel %vm72_vm0, %v54_v45, 0.0  ;;  %v58_v57 = vmul.f32 %v718_v53, %v718_v53  ;;  %v61_v62 = vmul.f32 %v729_v58, %v729_v58  ;;  %v60_v63 = vmul.f32 %v734_v59, %v734_v59  ;;  %v814_v39 = vld [vmem:[%s984_s0 + $0xf0] sm:$0xff] }
   0xc   :  { %v124_v54 = vsel %vm72_vm0, %v57_v50, 0.0  ;;  %v121_v55 = vsel %vm72_vm0, %v56_v51, 0.0  ;;  %v130_v60 = vsel %vm72_vm0, %v59_v56, 0.0  ;;  %v63_v10 = vmul.f32 %v745_v3, %v745_v3 }
   0xd   :  { %89 = vadd.xlane.f32.xlu1 %v88_v18  ;;  %86 = vadd.xlane.f32.xlu0 %v85_v19  ;;  %v127_v61 = vsel %vm72_vm0, %v58_v57, 0.0  ;;  %v136_v5 = vsel %vm72_vm0, %v61_v62, 0.0  ;;  %v133_v7 = vsel %vm72_vm0, %v60_v63, 0.0  ;;  %v62_v11 = vmul.f32 %v750_v4, %v750_v4 }
   0xe   :  { %v142_v14 = vsel %vm72_vm0, %v63_v10, 0.0  ;;  %v65_v18 = vmul.f32 %v761_v12, %v761_v12  ;;  %v64_v19 = vmul.f32 %v766_v13, %v766_v13  ;;  %v67_v26 = vmul.f32 %v777_v20, %v777_v20 }
   0xf   :  { %v139_v15 = vsel %vm72_vm0, %v62_v11, 0.0  ;;  %v66_v27 = vmul.f32 %v782_v21, %v782_v21  ;;  %v71_v44 = vmul.f32 %v809_v38, %v809_v38  ;;  %v70_v45 = vmul.f32 %v814_v39, %v814_v39 }
  0x10   :  { %v154_v32 = vsel %vm72_vm0, %v67_v26, 0.0 }
  0x11   :  { %95 = vadd.xlane.f32.xlu1 %v94_v24  ;;  %92 = vadd.xlane.f32.xlu0 %v91_v25  ;;  %v148_v24 = vsel %vm72_vm0, %v65_v18, 0.0  ;;  %v145_v25 = vsel %vm72_vm0, %v64_v19, 0.0  ;;  %v151_v33 = vsel %vm72_vm0, %v66_v27, 0.0 }
  0x15   :  { %101 = vadd.xlane.f32.xlu1 %v100_v30  ;;  %98 = vadd.xlane.f32.xlu0 %v97_v31  ;;  %v793_v30 = vld [vmem:[%s984_s0 + $0xe8] sm:$0xff]  ;;  %v798_v31 = vld [vmem:[%s984_s0 + $0xe0] sm:$0xff] }
  0x19   :  { %107 = vadd.xlane.f32.xlu1 %v106_v36  ;;  %104 = vadd.xlane.f32.xlu0 %v103_v37  ;;  %v69_v36 = vmul.f32 %v793_v30, %v793_v30  ;;  %v68_v37 = vmul.f32 %v798_v31, %v798_v31 }
  0x1d   :  { %113 = vadd.xlane.f32.xlu1 %v112_v42  ;;  %110 = vadd.xlane.f32.xlu0 %v109_v43  ;;  %v160_v42 = vsel %vm72_vm0, %v69_v36, 0.0  ;;  %v157_v43 = vsel %vm72_vm0, %v68_v37, 0.0 }
  0x21   :  { %119 = vadd.xlane.f32.xlu1 %v118_v48  ;;  %116 = vadd.xlane.f32.xlu0 %v115_v49  ;;  %v166_v48 = vsel %vm72_vm0, %v71_v44, 0.0  ;;  %v163_v49 = vsel %vm72_vm0, %v70_v45, 0.0 }
  0x25   :  { %125 = vadd.xlane.f32.xlu1 %v124_v54  ;;  %122 = vadd.xlane.f32.xlu0 %v121_v55 }
  0x29   :  { %131 = vadd.xlane.f32.xlu1 %v130_v60  ;;  %128 = vadd.xlane.f32.xlu0 %v127_v61 }
  0x2d   :  { %137 = vadd.xlane.f32.xlu1 %v136_v5  ;;  %134 = vadd.xlane.f32.xlu0 %v133_v7 }
  0x31   :  { %143 = vadd.xlane.f32.xlu1 %v142_v14  ;;  %140 = vadd.xlane.f32.xlu0 %v139_v15 }
  0x35   :  { %149 = vadd.xlane.f32.xlu1 %v148_v24  ;;  %146 = vadd.xlane.f32.xlu0 %v145_v25 }
  0x39   :  { %155 = vadd.xlane.f32.xlu1 %v154_v32  ;;  %152 = vadd.xlane.f32.xlu0 %v151_v33 }
  0x3d   :  { %161 = vadd.xlane.f32.xlu1 %v160_v42  ;;  %158 = vadd.xlane.f32.xlu0 %v157_v43 }
  0x41   :  { %167 = vadd.xlane.f32.xlu1 %v166_v48  ;;  %164 = vadd.xlane.f32.xlu0 %v163_v49 }
  0x92   :  { %v81_v50 = vpop.xlane.xlu1 %80  ;;  %v75_v51 = vpop.xlane.xlu0 %74 }
  0x93   :  { %v171_v54 = vmax.f32 %v81_v50, 1e-24  ;;  %v169_v55 = vmax.f32 %v75_v51, 1e-24 }
  0x95   :  { %494 = vrsqrt.f32 %v171_v54 }
  0x96   :  { %496 = vrsqrt.f32 %v169_v55  ;;  %v84_v56 = vpop.xlane.xlu1 %83  ;;  %v78_v57 = vpop.xlane.xlu0 %77 }
  0x97   :  { %v172_v60 = vmax.f32 %v84_v56, 1e-24  ;;  %v170_v61 = vmax.f32 %v78_v57, 1e-24 }
  0x99   :  { %498 = vrsqrt.f32 %v172_v60 }
  0x9a   :  { %500 = vrsqrt.f32 %v170_v61  ;;  %v90_v62 = vpop.xlane.xlu1 %89  ;;  %v87_v63 = vpop.xlane.xlu0 %86 }
  0x9b   :  { %v174_v5 = vmax.f32 %v90_v62, 1e-24  ;;  %v173_v7 = vmax.f32 %v87_v63, 1e-24 }
  0x9d   :  { %502 = vrsqrt.f32 %v174_v5 }
  0x9e   :  { %504 = vrsqrt.f32 %v173_v7  ;;  %v96_v10 = vpop.xlane.xlu1 %95  ;;  %v93_v11 = vpop.xlane.xlu0 %92 }
  0x9f   :  { %v495_v14 = vpop.eup %494  ;;  %v176_v15 = vmax.f32 %v96_v10, 1e-24  ;;  %v175_v18 = vmax.f32 %v93_v11, 1e-24 }
  0xa0   :  { %v497_v19 = vpop.eup %496  ;;  %v235_v24 = vmul.f32 %v495_v14, %v571_v0 }
  0xa1   :  { %v233_v25 = vmul.f32 %v497_v19, %v576_v1  ;;  %506 = vrsqrt.f32 %v176_v15 }
  0xa2   :  { %v464_v26 = vpack.c.bf16 %v235_v24, %v235_v24  ;;  %508 = vrsqrt.f32 %v175_v18  ;;  %v102_v27 = vpop.xlane.xlu1 %101  ;;  %v99_v32 = vpop.xlane.xlu0 %98 }
  0xa3   :  { %v499_v33 = vpop.eup %498  ;;  %v462_v36 = vpack.c.bf16 %v233_v25, %v233_v25  ;;  %v178_v37 = vmax.f32 %v102_v27, 1e-24  ;;  %v177_v42 = vmax.f32 %v99_v32, 1e-24 }
  0xa4   :  { %v501_v43 = vpop.eup %500  ;;  %396 = vst.msk [vmem:[%s985_s1 + $0x8] sm:$0xf] %vm393_vm1, %v464_v26  ;;  %v236_v0 = vmul.f32 %v499_v33, %v581_v2 }
  0xa5   :  { %394 = vst.msk [vmem:[%s985_s1] sm:$0xf] %vm393_vm1, %v462_v36  ;;  %v234_v1 = vmul.f32 %v501_v43, %v592_v6  ;;  %510 = vrsqrt.f32 %v178_v37 }
  0xa6   :  { %v465_v44 = vpack.c.bf16 %v236_v0, %v236_v0  ;;  %512 = vrsqrt.f32 %v177_v42  ;;  %v108_v45 = vpop.xlane.xlu1 %107  ;;  %v105_v48 = vpop.xlane.xlu0 %104 }
  0xa7   :  { %v503_v49 = vpop.eup %502  ;;  %v463_v50 = vpack.c.bf16 %v234_v1, %v234_v1  ;;  %v180_v51 = vmax.f32 %v108_v45, 1e-24  ;;  %v179_v54 = vmax.f32 %v105_v48, 1e-24 }
  0xa8   :  { %v505_v55 = vpop.eup %504  ;;  %397 = vst.msk [vmem:[%s985_s1 + $0xc] sm:$0xf] %vm393_vm1, %v465_v44  ;;  %v238_v2 = vmul.f32 %v503_v49, %v599_v8 }
  0xa9   :  { %395 = vst.msk [vmem:[%s985_s1 + $0x4] sm:$0xf] %vm393_vm1, %v463_v50  ;;  %v237_v6 = vmul.f32 %v505_v55, %v604_v9  ;;  %514 = vrsqrt.f32 %v180_v51 }
  0xaa   :  { %v467_v56 = vpack.c.bf16 %v238_v2, %v238_v2  ;;  %516 = vrsqrt.f32 %v179_v54  ;;  %v114_v57 = vpop.xlane.xlu1 %113  ;;  %v111_v60 = vpop.xlane.xlu0 %110 }
  0xab   :  { %v507_v61 = vpop.eup %506  ;;  %v466_v62 = vpack.c.bf16 %v237_v6, %v237_v6  ;;  %v182_v63 = vmax.f32 %v114_v57, 1e-24  ;;  %v181_v5 = vmax.f32 %v111_v60, 1e-24 }
  0xac   :  { %v509_v7 = vpop.eup %508  ;;  %399 = vst.msk [vmem:[%s985_s1 + $0x14] sm:$0xf] %vm393_vm1, %v467_v56  ;;  %v240_v8 = vmul.f32 %v507_v61, %v617_v16 }
  0xad   :  { %398 = vst.msk [vmem:[%s985_s1 + $0x10] sm:$0xf] %vm393_vm1, %v466_v62  ;;  %v239_v9 = vmul.f32 %v509_v7, %v622_v17  ;;  %518 = vrsqrt.f32 %v182_v63 }
  0xae   :  { %v469_v10 = vpack.c.bf16 %v240_v8, %v240_v8  ;;  %520 = vrsqrt.f32 %v181_v5  ;;  %v120_v11 = vpop.xlane.xlu1 %119  ;;  %v117_v14 = vpop.xlane.xlu0 %116 }
  0xaf   :  { %v511_v15 = vpop.eup %510  ;;  %v468_v18 = vpack.c.bf16 %v239_v9, %v239_v9  ;;  %v184_v19 = vmax.f32 %v120_v11, 1e-24  ;;  %v183_v24 = vmax.f32 %v117_v14, 1e-24 }
  0xb0   :  { %v513_v25 = vpop.eup %512  ;;  %401 = vst.msk [vmem:[%s985_s1 + $0x1c] sm:$0xf] %vm393_vm1, %v469_v10  ;;  %v242_v16 = vmul.f32 %v511_v15, %v633_v22 }
  0xb1   :  { %400 = vst.msk [vmem:[%s985_s1 + $0x18] sm:$0xf] %vm393_vm1, %v468_v18  ;;  %v241_v17 = vmul.f32 %v513_v25, %v638_v23  ;;  %522 = vrsqrt.f32 %v184_v19 }
  0xb2   :  { %v471_v26 = vpack.c.bf16 %v242_v16, %v242_v16  ;;  %524 = vrsqrt.f32 %v183_v24  ;;  %v126_v27 = vpop.xlane.xlu1 %125  ;;  %v123_v32 = vpop.xlane.xlu0 %122 }
  0xb3   :  { %v515_v33 = vpop.eup %514  ;;  %v470_v36 = vpack.c.bf16 %v241_v17, %v241_v17  ;;  %v186_v37 = vmax.f32 %v126_v27, 1e-24  ;;  %v185_v42 = vmax.f32 %v123_v32, 1e-24 }
  0xb4   :  { %v517_v43 = vpop.eup %516  ;;  %403 = vst.msk [vmem:[%s985_s1 + $0x24] sm:$0xf] %vm393_vm1, %v471_v26  ;;  %v244_v22 = vmul.f32 %v515_v33, %v649_v28 }
  0xb5   :  { %402 = vst.msk [vmem:[%s985_s1 + $0x20] sm:$0xf] %vm393_vm1, %v470_v36  ;;  %v243_v23 = vmul.f32 %v517_v43, %v654_v29  ;;  %526 = vrsqrt.f32 %v186_v37 }
  0xb6   :  { %v473_v0 = vpack.c.bf16 %v244_v22, %v244_v22  ;;  %528 = vrsqrt.f32 %v185_v42  ;;  %v132_v1 = vpop.xlane.xlu1 %131  ;;  %v129_v44 = vpop.xlane.xlu0 %128 }
  0xb7   :  { %v519_v45 = vpop.eup %518  ;;  %v472_v48 = vpack.c.bf16 %v243_v23, %v243_v23  ;;  %v188_v49 = vmax.f32 %v132_v1, 1e-24  ;;  %v187_v50 = vmax.f32 %v129_v44, 1e-24 }
  0xb8   :  { %v521_v51 = vpop.eup %520  ;;  %405 = vst.msk [vmem:[%s985_s1 + $0x2c] sm:$0xf] %vm393_vm1, %v473_v0  ;;  %v246_v28 = vmul.f32 %v519_v45, %v665_v34 }
  0xb9   :  { %404 = vst.msk [vmem:[%s985_s1 + $0x28] sm:$0xf] %vm393_vm1, %v472_v48  ;;  %v245_v29 = vmul.f32 %v521_v51, %v670_v35  ;;  %530 = vrsqrt.f32 %v188_v49 }
  0xba   :  { %v475_v54 = vpack.c.bf16 %v246_v28, %v246_v28  ;;  %532 = vrsqrt.f32 %v187_v50  ;;  %v138_v55 = vpop.xlane.xlu1 %137  ;;  %v135_v2 = vpop.xlane.xlu0 %134 }
  0xbb   :  { %v523_v6 = vpop.eup %522  ;;  %v474_v56 = vpack.c.bf16 %v245_v29, %v245_v29  ;;  %v190_v57 = vmax.f32 %v138_v55, 1e-24  ;;  %v189_v60 = vmax.f32 %v135_v2, 1e-24 }
  0xbc   :  { %v525_v61 = vpop.eup %524  ;;  %407 = vst.msk [vmem:[%s985_s1 + $0x34] sm:$0xf] %vm393_vm1, %v475_v54  ;;  %v248_v34 = vmul.f32 %v523_v6, %v681_v40 }
  0xbd   :  { %406 = vst.msk [vmem:[%s985_s1 + $0x30] sm:$0xf] %vm393_vm1, %v474_v56  ;;  %v247_v35 = vmul.f32 %v525_v61, %v686_v41  ;;  %534 = vrsqrt.f32 %v190_v57 }
  0xbe   :  { %v477_v62 = vpack.c.bf16 %v248_v34, %v248_v34  ;;  %536 = vrsqrt.f32 %v189_v60  ;;  %v144_v63 = vpop.xlane.xlu1 %143  ;;  %v141_v5 = vpop.xlane.xlu0 %140 }
  0xbf   :  { %v527_v7 = vpop.eup %526  ;;  %v476_v8 = vpack.c.bf16 %v247_v35, %v247_v35  ;;  %v192_v9 = vmax.f32 %v144_v63, 1e-24  ;;  %v191_v10 = vmax.f32 %v141_v5, 1e-24 }
  0xc0   :  { %v529_v11 = vpop.eup %528  ;;  %409 = vst.msk [vmem:[%s985_s1 + $0x3c] sm:$0xf] %vm393_vm1, %v477_v62  ;;  %v250_v40 = vmul.f32 %v527_v7, %v697_v46 }
  0xc1   :  { %408 = vst.msk [vmem:[%s985_s1 + $0x38] sm:$0xf] %vm393_vm1, %v476_v8  ;;  %v249_v41 = vmul.f32 %v529_v11, %v702_v47  ;;  %538 = vrsqrt.f32 %v192_v9 }
  0xc2   :  { %v479_v14 = vpack.c.bf16 %v250_v40, %v250_v40  ;;  %540 = vrsqrt.f32 %v191_v10  ;;  %v150_v15 = vpop.xlane.xlu1 %149  ;;  %v147_v18 = vpop.xlane.xlu0 %146 }
  0xc3   :  { %v531_v19 = vpop.eup %530  ;;  %v478_v24 = vpack.c.bf16 %v249_v41, %v249_v41  ;;  %v194_v25 = vmax.f32 %v150_v15, 1e-24  ;;  %v193_v16 = vmax.f32 %v147_v18, 1e-24 }
  0xc4   :  { %v533_v17 = vpop.eup %532  ;;  %411 = vst.msk [vmem:[%s985_s1 + $0x44] sm:$0xf] %vm393_vm1, %v479_v14  ;;  %v252_v46 = vmul.f32 %v531_v19, %v713_v52 }
  0xc5   :  { %410 = vst.msk [vmem:[%s985_s1 + $0x40] sm:$0xf] %vm393_vm1, %v478_v24  ;;  %v251_v47 = vmul.f32 %v533_v17, %v718_v53  ;;  %542 = vrsqrt.f32 %v194_v25 }
  0xc6   :  { %v481_v26 = vpack.c.bf16 %v252_v46, %v252_v46  ;;  %544 = vrsqrt.f32 %v193_v16  ;;  %v156_v27 = vpop.xlane.xlu1 %155  ;;  %v153_v32 = vpop.xlane.xlu0 %152 }
  0xc7   :  { %v535_v33 = vpop.eup %534  ;;  %v480_v36 = vpack.c.bf16 %v251_v47, %v251_v47  ;;  %v196_v37 = vmax.f32 %v156_v27, 1e-24  ;;  %v195_v42 = vmax.f32 %v153_v32, 1e-24 }
  0xc8   :  { %v537_v43 = vpop.eup %536  ;;  %413 = vst.msk [vmem:[%s985_s1 + $0x4c] sm:$0xf] %vm393_vm1, %v481_v26  ;;  %v254_v52 = vmul.f32 %v535_v33, %v729_v58 }
  0xc9   :  { %412 = vst.msk [vmem:[%s985_s1 + $0x48] sm:$0xf] %vm393_vm1, %v480_v36  ;;  %v253_v53 = vmul.f32 %v537_v43, %v734_v59  ;;  %546 = vrsqrt.f32 %v196_v37 }
  0xca   :  { %v483_v22 = vpack.c.bf16 %v254_v52, %v254_v52  ;;  %548 = vrsqrt.f32 %v195_v42  ;;  %v162_v23 = vpop.xlane.xlu1 %161  ;;  %v159_v0 = vpop.xlane.xlu0 %158 }
  0xcb   :  { %v539_v1 = vpop.eup %538  ;;  %v482_v44 = vpack.c.bf16 %v253_v53, %v253_v53  ;;  %v198_v45 = vmax.f32 %v162_v23, 1e-24  ;;  %v197_v48 = vmax.f32 %v159_v0, 1e-24 }
  0xcc   :  { %v541_v49 = vpop.eup %540  ;;  %415 = vst.msk [vmem:[%s985_s1 + $0x54] sm:$0xf] %vm393_vm1, %v483_v22  ;;  %v256_v58 = vmul.f32 %v539_v1, %v745_v3 }
  0xcd   :  { %414 = vst.msk [vmem:[%s985_s1 + $0x50] sm:$0xf] %vm393_vm1, %v482_v44  ;;  %v255_v59 = vmul.f32 %v541_v49, %v750_v4  ;;  %550 = vrsqrt.f32 %v198_v45 }
  0xce   :  { %v485_v50 = vpack.c.bf16 %v256_v58, %v256_v58  ;;  %552 = vrsqrt.f32 %v197_v48  ;;  %v168_v51 = vpop.xlane.xlu1 %167  ;;  %v165_v28 = vpop.xlane.xlu0 %164 }
  0xcf   :  { %v543_v29 = vpop.eup %542  ;;  %v484_v54 = vpack.c.bf16 %v255_v59, %v255_v59  ;;  %v200_v55 = vmax.f32 %v168_v51, 1e-24  ;;  %v199_v2 = vmax.f32 %v165_v28, 1e-24 }
  0xd0   :  { %v545_v6 = vpop.eup %544  ;;  %417 = vst.msk [vmem:[%s985_s1 + $0x5c] sm:$0xf] %vm393_vm1, %v485_v50  ;;  %v258_v3 = vmul.f32 %v543_v29, %v761_v12 }
  0xd1   :  { %416 = vst.msk [vmem:[%s985_s1 + $0x58] sm:$0xf] %vm393_vm1, %v484_v54  ;;  %v257_v4 = vmul.f32 %v545_v6, %v766_v13  ;;  %554 = vrsqrt.f32 %v200_v55 }
  0xd2   :  { %v487_v56 = vpack.c.bf16 %v258_v3, %v258_v3  ;;  %556 = vrsqrt.f32 %v199_v2 }
  0xd3   :  { %v547_v57 = vpop.eup %546  ;;  %v486_v60 = vpack.c.bf16 %v257_v4, %v257_v4 }
  0xd4   :  { %v549_v61 = vpop.eup %548  ;;  %419 = vst.msk [vmem:[%s985_s1 + $0x64] sm:$0xf] %vm393_vm1, %v487_v56  ;;  %v260_v12 = vmul.f32 %v547_v57, %v777_v20 }
  0xd5   :  { %418 = vst.msk [vmem:[%s985_s1 + $0x60] sm:$0xf] %vm393_vm1, %v486_v60  ;;  %v259_v13 = vmul.f32 %v549_v61, %v782_v21 }
  0xd6   :  { %v489_v34 = vpack.c.bf16 %v260_v12, %v260_v12 }
  0xd7   :  { %v551_v35 = vpop.eup %550  ;;  %v488_v62 = vpack.c.bf16 %v259_v13, %v259_v13 }
  0xd8   :  { %v553_v63 = vpop.eup %552  ;;  %421 = vst.msk [vmem:[%s985_s1 + $0x6c] sm:$0xf] %vm393_vm1, %v489_v34  ;;  %v262_v5 = vmul.f32 %v551_v35, %v793_v30 }
  0xd9   :  { %420 = vst.msk [vmem:[%s985_s1 + $0x68] sm:$0xf] %vm393_vm1, %v488_v62  ;;  %v261_v20 = vmul.f32 %v553_v63, %v798_v31 }
  0xda   :  { %v491_v7 = vpack.c.bf16 %v262_v5, %v262_v5 }
  0xdb   :  { %v555_v21 = vpop.eup %554  ;;  %v490_v8 = vpack.c.bf16 %v261_v20, %v261_v20 }
  0xdc   :  { %v557_v9 = vpop.eup %556  ;;  %423 = vst.msk [vmem:[%s985_s1 + $0x74] sm:$0xf] %vm393_vm1, %v491_v7  ;;  %v264_v10 = vmul.f32 %v555_v21, %v809_v38 }
  0xdd   :  { %422 = vst.msk [vmem:[%s985_s1 + $0x70] sm:$0xf] %vm393_vm1, %v490_v8  ;;  %v263_v30 = vmul.f32 %v557_v9, %v814_v39 }
  0xde   :  { %v493_v11 = vpack.c.bf16 %v264_v10, %v264_v10 }
  0xdf   :  { %v492_v31 = vpack.c.bf16 %v263_v30, %v263_v30 }
  0xe0   :  { %425 = vst.msk [vmem:[%s985_s1 + $0x7c] sm:$0xf] %vm393_vm1, %v493_v11 }
  0xe1   :  { %424 = vst.msk [vmem:[%s985_s1 + $0x78] sm:$0xf] %vm393_vm1, %v492_v31 }

</bundles_post_ra>
